<compile_context>
chip_gen: v6e
topology: v6e:2x2x1
jax: 0.10.0
libtpu: 0.0.40
codegen_flags: <defaults>
</compile_context>

<pallas_src>
import jax
import jax.numpy as jnp
from jax.experimental import pallas as pl
from jax.experimental.pallas import tpu as pltpu


def _randclass_kernel(x_ref, xt_ref, out_ref):
    # x_ref : (tile_b, C)  logits (caller dtype, streamed as-is)
    # xt_ref: (tile_b, 1)  pre-gathered target-class logit
    # out_ref:(tile_b, 1)  f32 per-row target-class probability
    x = x_ref[...].astype(jnp.float32)

    # Numerically-stable softmax pieces along the class (lane) axis.
    m = jnp.max(x, axis=1, keepdims=True)
    denom = jnp.sum(jnp.exp(x - m), axis=1, keepdims=True)

    # Numerator straight from the pre-gathered target logit: no iota /
    # compare / where / extra lane reduction needed in-kernel.
    num = jnp.exp(xt_ref[...].astype(jnp.float32) - m)

    # Exact reciprocal (approx=False) to hold the 1e-6 tolerance.
    out_ref[...] = num * pl.reciprocal(denom, approx=False)


def _round_up(v, m):
    return -(-v // m) * m


def _pick_tile_b(batch, classes, in_itemsize):
    """Generation-aware batch-tile size + scoped-VMEM limit."""
    try:
        vmem_cap = int(pltpu.get_tpu_info().vmem_capacity_bytes)
    except Exception:
        vmem_cap = 64 * 1024 * 1024  # conservative fallback (v7x per-TC VMEM)

    # Sublane packing of the *input* dtype: f32 -> 8, bf16 -> 16, int8 -> 32.
    packing = max(8, 32 // max(1, in_itemsize))

    if batch <= packing:
        # Single full-extent block (block dim == array dim is always legal).
        return batch, int(vmem_cap * 0.75)

    # Per-row VMEM footprint with the lane-padded class dim:
    #   2 x double-buffered input tile (input dtype)
    # + ~2 x f32 in-kernel temporaries (upcast x, exp(x - m)).
    c_pad = _round_up(classes, 128)
    bytes_per_row = c_pad * (2 * in_itemsize + 2 * 4)

    budget = int(vmem_cap * 0.4)          # leave headroom for pipeline/scratch
    tile_b = budget // max(1, bytes_per_row)
    tile_b = max(packing, (tile_b // packing) * packing)

    # Keep >= 2 grid tiles so the "parallel" axis feeds both v7x TensorCores.
    half_cap = _round_up(-(-batch // 2), packing)
    tile_b = min(tile_b, half_cap)

    return tile_b, int(vmem_cap * 0.75)


def rand_class_loss(x, y_target, reduction="mean"):
    """x: (B, C) float logits (f32/bf16); y_target: (B,) int target classes in [0, C)."""
    B, C = x.shape
    tile_b, vmem_limit = _pick_tile_b(B, C, jnp.dtype(x.dtype).itemsize)
    n_tiles = pl.cdiv(B, tile_b)

    # Pre-gather the target logit (reads B elements, vs. a full B*C pass if
    # done with an in-kernel one-hot select).  OOB targets are clamped by XLA.
    yt = y_target.astype(jnp.int32).reshape(B, 1)
    x_tgt = jnp.take_along_axis(x, yt, axis=1)

    per_sample = pl.pallas_call(
        _randclass_kernel,
        out_shape=jax.ShapeDtypeStruct((B, 1), jnp.float32),
        grid=(n_tiles,),
        in_specs=[
            pl.BlockSpec((tile_b, C), lambda i: (i, 0)),
            pl.BlockSpec((tile_b, 1), lambda i: (i, 0)),
        ],
        out_specs=pl.BlockSpec((tile_b, 1), lambda i: (i, 0)),
        compiler_params=pltpu.CompilerParams(
            dimension_semantics=("parallel",),
            vmem_limit_bytes=vmem_limit,
        ),
    )(x, x_tgt)[:, 0]

    # Match PyTorch: result carries the input dtype.
    per_sample = per_sample.astype(x.dtype)

    if reduction == "mean":
        return jnp.mean(per_sample)
    elif reduction == "none":
        return per_sample
    else:
        raise ValueError("Error, reduction unknown!")


# TODO(synk): the in-forward `random.choice` re-sampling of y_target (when y is
# passed to forward) is stateful host RNG; replaced by this deterministic helper.
def make_rand_targets(key, y, classes):
    """Deterministic stand-in for random.choice([i != l]): guarantees y_target != y."""
    offs = jax.random.randint(key, (y.shape[0],), 1, classes)  # in [1, classes-1]
    return (y + offs) % classes


if __name__ == "__main__":
    B, C = 20, 10
    key = jax.random.PRNGKey(0)
    kx, ky, kt = jax.random.split(key, 3)

    x = jax.random.normal(kx, (B, C), dtype=jnp.float32)
    y = jax.random.randint(ky, (B,), 0, C)
    y_target = make_rand_targets(kt, y, C)

    # tile_b resolves to 16 here (>=2-tile rule) -> grid of 2 with a ragged
    # last block: exercises the no-pad boundary path end to end.
    out_none = rand_class_loss(x, y_target, reduction="none")
    out_mean = rand_class_loss(x, y_target, reduction="mean")
    jax.block_until_ready((out_none, out_mean))

    # Pure-JAX reference check (also verifies the ragged last block did not
    # poison any valid rows).
    ref = jax.nn.softmax(x, axis=1)[jnp.arange(B), y_target]
    assert jnp.allclose(out_none, ref, atol=1e-6), "per-sample mismatch"
    assert jnp.allclose(out_mean, ref.mean(), atol=1e-6), "mean mismatch"

    print("KERNEL_OK")
</pallas_src>

<mosaic_0001>
module attributes {stable_mosaic.version = 11 : i64} {
  func.func @_randclass_kernel(%arg0: i32, %arg1: memref<16x10xf32, #tpu.memory_space<vmem>>, %arg2: memref<16x1xf32, #tpu.memory_space<vmem>>, %arg3: memref<16x1xf32, #tpu.memory_space<vmem>>) attributes {dimension_semantics = [#tpu.dimension_semantics<parallel>], iteration_bounds = array<i64: 2>, scalar_prefetch = 0 : i64, scratch_operands = 0 : i64, tpu.core_type = #tpu.core_type<tc>, window_params = [{transform_indices = @transform_0, window_bounds = array<i64: 16, 10>}, {transform_indices = @transform_1, window_bounds = array<i64: 16, 1>}, {transform_indices = @transform_2, window_bounds = array<i64: 16, 1>}]} {
    %c0 = arith.constant 0 : index
    %c0_0 = arith.constant 0 : index
    %0 = vector.load %arg1[%c0, %c0_0] : memref<16x10xf32, #tpu.memory_space<vmem>>, vector<16x10xf32>
    %cst = arith.constant dense<0xFF800000> : vector<16xf32>
    %1 = vector.multi_reduction <maximumf>, %0, %cst [1] : vector<16x10xf32> to vector<16xf32>
    %2 = vector.shape_cast %1 : vector<16xf32> to vector<16x1xf32>
    %3 = vector.broadcast %2 : vector<16x1xf32> to vector<16x10xf32>
    %4 = arith.subf %0, %3 : vector<16x10xf32>
    %5 = math.exp %4 : vector<16x10xf32>
    %cst_1 = arith.constant dense<0.000000e+00> : vector<16xf32>
    %6 = vector.multi_reduction <add>, %5, %cst_1 [1] : vector<16x10xf32> to vector<16xf32>
    %7 = vector.shape_cast %6 : vector<16xf32> to vector<16x1xf32>
    %c0_2 = arith.constant 0 : index
    %c0_3 = arith.constant 0 : index
    %8 = vector.load %arg2[%c0_2, %c0_3] : memref<16x1xf32, #tpu.memory_space<vmem>>, vector<16x1xf32>
    %9 = arith.subf %8, %2 : vector<16x1xf32>
    %10 = math.exp %9 : vector<16x1xf32>
    %11 = tpu.reciprocal %7 : vector<16x1xf32> -> vector<16x1xf32>
    %12 = arith.mulf %10, %11 : vector<16x1xf32>
    %c0_4 = arith.constant 0 : index
    %c0_5 = arith.constant 0 : index
    %13 = vector.load %arg3[%c0_4, %c0_5] : memref<16x1xf32, #tpu.memory_space<vmem>>, vector<16x1xf32>
    tpu.vector_store %arg3[%c0_4, %c0_5], %12 {strides = array<i32>} : memref<16x1xf32, #tpu.memory_space<vmem>>, vector<16x1xf32>,
    return
  }
  func.func @transform_0(%arg0: i32) -> (i32, i32) {
    %c0_i32 = arith.constant 0 : i32
    %c0_i32_0 = arith.constant 0 : i32
    return %arg0, %c0_i32 : i32, i32
  }
  func.func @transform_1(%arg0: i32) -> (i32, i32) {
    %c0_i32 = arith.constant 0 : i32
    %c0_i32_0 = arith.constant 0 : i32
    return %arg0, %c0_i32 : i32, i32
  }
  func.func @transform_2(%arg0: i32) -> (i32, i32) {
    %c0_i32 = arith.constant 0 : i32
    %c0_i32_0 = arith.constant 0 : i32
    return %arg0, %c0_i32 : i32, i32
  }
}

</mosaic_0001>

<bundles_post_ra>
// kernel: tpu_custom_call.1
= control target key start
LH: loop header
LB: loop body
LE: loop exit
PB: predicated region body
PF: predicated region fallthrough
CT: control target
= control target key end

     0   :  { %s707_s9 = smov 0   ;;  %s709_s10 = smov 0   ;;  %s797_s0 = inlined_call_operand.vmem [shape: f32[20,10], index: 0, kind: input, shape index: {}]   ;;  %s798_s1 = inlined_call_operand.vmem [shape: f32[20,1], index: 1, kind: input, shape index: {}]   ;;  %s799_s2 = inlined_call_operand.vmem [shape: f32[20,1], index: 2, kind: output, shape index: {}]  }
   0x1   :  { %s711_s11 = smov 0  }
   0x2 LB: > { %s720_s12 = sadd.s32 4294967295, %s658_s11   ;;  %s722_s13 = sadd.s32 1, %s658_s11   ;;  %s658_s11 = sphi %s711_s11, %s803_s11   ;;  %s654_s10 = sphi %s709_s10, %s802_s10   ;;  %s650_s9 = sphi %s707_s9, %s801_s9  }
   0x3   : > { %s68_s14 = ssub.s32 %s658_s11, %s722_s13  ;;  %s71_s15 = sadd.s32 1, %s654_s10 }
   0x4   : > { %p69_p0 = scmp.eq.s32.totalorder %s68_s14, 0  ;;  %p81_p1 = scmp.ne.s32.totalorder %s654_s10, %s650_s9 }
   0x5   : > { %p82_p2 = scmp.eq.s32.totalorder %s720_s12, 1  ;;  %p478_p3 = scmp.ge.s32.totalorder %s658_s11, 1 }
   0x6   : > { %s730_s16 = scalar_select %p69_p0, %s654_s10, %s71_s15  }
   0x7   : > { %p732_p4 = por %p82_p2, %p81_p1  ;;  %p140_p5 = scmp.lt.s32.totalorder %s658_s11, 3 }
   0x9   : > { %p141_p6 = pnand %p478_p3, %p140_p5 }
   0xa   : > { %s737_s18 = sshll.u32 (!%p141_p6), %s720_s12, 1  ;;  %s171_s27 = sand.u32 (!%p141_p6), 1, %s650_s9  }
   0xb   : > { %144 = sbr.rel (%p141_p6) target bundleno = 377 (0x179), region = 28  ;;  %p179_p7 = scmp.lt.s32.totalorder (!%p141_p6), %s737_s18, 2 }
   0xc   : > { %s479_s28 = sshll.u32 (!%p141_p6), %s171_s27, 4 }
   0xd   : > { %s752_s29 = scalar_lea.vmem (!%p141_p6), [#allocation2], %s479_s28  }
  0x10   : > { %s180_s19 = scalar_select %p179_p7, %s737_s18, 2  ;;  %vm209_vm0 = vcmask 80896   ;;  %vm240_vm1 = vcmask 7168  }
  0x11   : > { %s251_s30 = ssub.s32 (%p732_p4), 3, %s737_s18  ;;  %s501_s3 = sshll.u32 (%p732_p4), %s720_s12, 4 }
  0x12   : > { %s481_s20 = sshll.u32 %s180_s19, 3  ;;  %p252_p8 = scmp.lt.s32.totalorder (%p732_p4), %s251_s30, 2 }
  0x13   : > { %s182_s23 = scalar_lea.vmem %s797_s0, %s481_s20  ;;  %s196_s26 = scalar_lea.vmem %s798_s1, %s481_s20 }
  0x14   : > { %v207_v0 = vld [vmem:[%s182_s23] sm:$0xff]  ;;  %v208_v1 = vld [vmem:[%s182_s23 + $0x8] sm:$0xff]  ;;  %s763_s6 = scalar_lea.vmem (%p732_p4), %s799_s2, %s501_s3  }
  0x15   : > { %v210_v2 = vsel %vm209_vm0, %v207_v0, -inf  ;;  %v213_v3 = vsel %vm209_vm0, %v208_v1, -inf  ;;  %v228_v4 = vld [vmem:[%s196_s26] sm:$0xff]  ;;  %v229_v8 = vld [vmem:[%s196_s26 + $0x8] sm:$0xff] }
  0x16   : > { %211 = vmax.xlane.f32.xlu0 %v210_v2 }
  0x1a   : > { %214 = vmax.xlane.f32.xlu0 %v213_v3 }
  0x9f   : > { %v212_v5 = vpop.xlane.xlu0 %211 }
  0xa0   : > { %v216_v6 = vsub.f32 %v207_v0, %v212_v5  ;;  %v230_v7 = vsub.f32 %v228_v4, %v212_v5 }
  0xa2   : > { %v218_v9 = vmul.f32 1.442695, %v216_v6  ;;  %v232_v18 = vmul.f32 1.442695, %v230_v7 }
  0xa3   : > { %v215_v10 = vpop.xlane.xlu0 %214 }
  0xa4   : > { %592 = vpow2.f32 %v218_v9  ;;  %v217_v11 = vsub.f32 %v208_v1, %v215_v10  ;;  %v231_v12 = vsub.f32 %v229_v8, %v215_v10 }
  0xa6   : > { %v220_v13 = vmul.f32 1.442695, %v217_v11  ;;  %v234_v19 = vmul.f32 1.442695, %v231_v12 }
  0xa8   : > { %594 = vpow2.f32 %v220_v13 }
  0xa9   : > { %596 = vpow2.f32 %v232_v18 }
  0xb1   : > { %v593_v14 = vpop.eup %592 }
  0xb2   : > { %v222_v15 = vsel %vm209_vm0, %v593_v14, 0.0 }
  0xb3   : > { %223 = vadd.xlane.f32.xlu1 %v222_v15 }
  0xb5   : > { %v595_v16 = vpop.eup %594 }
  0xb6   : > { %v225_v17 = vsel %vm209_vm0, %v595_v16, 0.0  ;;  %v597_v22 = vpop.eup %596 }
  0xb7   : > { %226 = vadd.xlane.f32.xlu1 %v225_v17 }
 0x13c   : > { %v224_v20 = vpop.xlane.xlu1 %223 }
 0x13d   : > { %598 = vrcp.f32 %v224_v20 }
 0x13e   : > { %600 = vpow2.f32 %v234_v19 }
 0x140   : > { %v227_v21 = vpop.xlane.xlu1 %226 }
 0x141   : > { %602 = vrcp.f32 %v227_v21 }
 0x14a   : > { %v599_v23 = vpop.eup %598 }
 0x14b   : > { %v238_v24 = vmul.f32 %v599_v23, %v597_v22  ;;  %v601_v25 = vpop.eup %600 }
 0x14d   : > { %241 = vst.msk [vmem:[%s752_s29] sm:$0xff] %vm240_vm1, %v238_v24  ;;  %249 = sbr.rel (!%p732_p4) target bundleno = 377 (0x179), region = 32 }
 0x14e   : > { %v603_v26 = vpop.eup %602 }
 0x14f   : > { %v239_v27 = vmul.f32 %v603_v26, %v601_v25 }
 0x151   : > { %242 = vst.msk [vmem:[%s752_s29 + $0x8] sm:$0xff] %vm240_vm1, %v239_v27 }
 0x152   : > { %s805_s30 = smov (!%p252_p8, %s251_s30), 2 }
 0x153   : > { %s486_s7 = sshll.u32 %s805_s30, 7 }
 0x154   : > { %p489_p9 = scmp.eq.s32.totalorder %s486_s7, 0 }
 0x155   : > { %s769_s8 = sshrl.u32 (!%p489_p9), %s805_s30, 1 }
 0x156   : > { %260 = sbr.rel (%p489_p9) target bundleno = 377 (0x179), region = 36  ;;  %p490_p10 = scmp.le.s32.totalorder (!%p489_p9), %s769_s8, 0 }
 0x15b   : > { %425 = sbr.rel (%p490_p10) target bundleno = 360 (0x168), region = 115  ;;  %s660_s9 = smov (!%p490_p10), %s763_s6  }
 0x15c   : > { %s664_s11 = smov (!%p490_p10), %s752_s29   ;;  %s668_s12 = smov (!%p490_p10), 0  }
 0x15d   : > { %s672_s14 = smov (!%p490_p10), 0  }
 0x160 LB: >> { %v325_v28 = vld [vmem:[%s666_s11] sm:$0xff]  ;;  %v327_v29 = vld [vmem:[%s666_s11 + $0x8] sm:$0xff]  ;;  %s329_s15 = sadd.s32 1, %s670_s12  ;;  %s319_s14 = sadd.s32 1, %s674_s14   ;;  %s674_s14 = sphi %s672_s14, %s319_s14   ;;  %s670_s12 = sphi %s668_s12, %s669_s12   ;;  %s666_s11 = sphi %s664_s11, %s334_s11   ;;  %s662_s9 = sphi %s660_s9, %s335_s9  }
 0x161   : >> { %326 = vst [vmem:[%s662_s9] sm:$0xff] %v325_v28  ;;  %328 = vst [vmem:[%s662_s9 + $0x8] sm:$0xff] %v327_v29  ;;  %p330_p11 = scmp.ge.s32.totalorder %s329_s15, %s769_s8  ;;  %p318_p12 = scmp.ge.s32.totalorder %s319_s14, %s769_s8 }
 0x163   : >> { %s807_s15 = smov (%p330_p11, %s329_s15), 0  ;;  %321 = sbr.rel (!%p318_p12) target bundleno = 352 (0x160), region = 121 }
 0x164   : >> { %s491_s17 = sshll.u32 %s807_s15, 4  ;;  %s669_s12 = smov %s807_s15  }
 0x165   : >> { %s334_s11 = scalar_lea.vmem %s752_s29, %s491_s17 [#allocation2]   ;;  %s335_s9 = scalar_lea.vmem %s763_s6, %s491_s17  }
 0x168 PF: > { %s779_s18 = sand.u32 1, %s805_s30   ;;  %s502_s19 = sshll.u32 %s769_s8, 4 }
 0x169   : > { %s340_s20 = scalar_lea.vmem %s752_s29, %s502_s19 [#allocation2]   ;;  %s342_s21 = scalar_lea.vmem %s763_s6, %s502_s19  }
 0x16a   : > { %p496_p13 = scmp.le.s32.totalorder %s779_s18, 0 }
 0x16b   : > { %s676_s22 = smov (!%p496_p13), %s342_s21   ;;  %s680_s23 = smov (!%p496_p13), %s340_s20  }
 0x16c   : > { %439 = sbr.rel (%p496_p13) target bundleno = 377 (0x179), region = 126  ;;  %s684_s24 = smov (!%p496_p13), 0  }
 0x16d   : > { %s688_s25 = smov (!%p496_p13), 0  }
 0x171 LB: >> { %v352_v30 = vld [vmem:[%s682_s23] sm:$0xff]  ;;  %s354_s26 = sadd.s32 1, %s686_s24  ;;  %s346_s25 = sadd.s32 1, %s690_s25   ;;  %s690_s25 = sphi %s688_s25, %s346_s25   ;;  %s686_s24 = sphi %s684_s24, %s685_s24   ;;  %s682_s23 = sphi %s680_s23, %s359_s23   ;;  %s678_s22 = sphi %s676_s22, %s360_s22  }
 0x172   : >> { %353 = vst [vmem:[%s678_s22] sm:$0xff] %v352_v30  ;;  %p355_p0 = scmp.ge.s32.totalorder %s354_s26, %s779_s18  ;;  %p345_p1 = scmp.ge.s32.totalorder %s346_s25, %s779_s18 }
 0x174   : >> { %s809_s26 = smov (%p355_p0, %s354_s26), 0  ;;  %348 = sbr.rel (!%p345_p1) target bundleno = 369 (0x171), region = 132 }
 0x175   : >> { %s497_s27 = sshll.u32 %s809_s26, 3  ;;  %s685_s24 = smov %s809_s26  }
 0x176   : >> { %s359_s23 = scalar_lea.vmem %s340_s20, %s497_s27 [#allocation2]   ;;  %s360_s22 = scalar_lea.vmem %s342_s21, %s497_s27  }
 0x179 PF: > { %p9_p2 = scmp.ge.s32.totalorder %s722_s13, 4   ;;  %s801_s9 = smov %s654_s10 }
 0x17a   : > { %s802_s10 = smov %s730_s16  ;;  %s803_s11 = smov %s722_s13 }
 0x17b   :  { %11 = sbr.rel (!%p9_p2) target bundleno = 2 (0x2), region = 143 }

</bundles_post_ra>
